<compile_context>
chip_gen: v5e
topology: v5e:2x2
jax: 0.10.0
libtpu: 0.0.40
codegen_flags: <defaults>
</compile_context>

<pallas_src>
import jax
import jax.numpy as jnp
from jax.experimental import pallas as pl
from jax.experimental.pallas import tpu as pltpu


_DEFAULT_TILE_TARGET = 16384  # batch rows per grid step (multiple of 128 lanes)


def _round_up(n, m):
    return ((n + m - 1) // m) * m


def thermometer_kernel(xt_ref, w1t_ref, b1_ref, w2_ref, bias_ref, o_ref):
    # xt_ref:  (IN, tile_b)   lane-dense x tile (batch on lanes)
    # w1t_ref: (3H, IN)       fused first-layer weight (resident)
    # b1_ref:  (3H, 1)        fused first-layer bias   (resident)
    # w2_ref:  (3H, 1)        fused second layer * fc_final weights (resident)
    # bias_ref: (1,) in SMEM  fused scalar bias
    # o_ref:   (1, tile_b)    lane-dense output tile
    h = jnp.dot(w1t_ref[...], xt_ref[...],
                preferred_element_type=jnp.float32)          # MXU: (3H, tile_b)
    h = jnp.maximum(h + b1_ref[...], 0.0)                    # VPU (lane-broadcast bias)
    # Weighted sublane reduce -> already lane-dense (1, tile_b); no relayout.
    o_ref[...] = jnp.sum(h * w2_ref[...], axis=0, keepdims=True) + bias_ref[0]


def pack_thermometer_params(p):
    """One-time host-side folding of the 7 Linear layers into 4 small tensors."""
    w1t = jnp.concatenate([p["w11"], p["w21"], p["w31"]], axis=1).T   # (3H, IN)
    b1 = jnp.concatenate([p["b11"], p["b21"], p["b31"]], axis=1).T    # (3H, 1)
    wf = p["wf"]                                                      # (3,)
    w2 = jnp.concatenate(
        [wf[0] * p["w12"][:, 0], wf[1] * p["w22"][:, 0], wf[2] * p["w32"][:, 0]]
    )[:, None]                                                        # (3H, 1)
    bias = (
        wf[0] * p["b12"][0] + wf[1] * p["b22"][0] + wf[2] * p["b32"][0] + p["bf"][0]
    ).reshape(1)                                                      # (1,)
    return {"w1t": w1t, "b1": b1, "w2": w2, "bias": bias}


def thermometer_forward(x, packed, *, tile_b=None):
    B, in_size = x.shape
    three_h = packed["w1t"].shape[0]

    if tile_b is None:
        # Big tiles amortize the ~0.35us fixed per-step overhead; cap at half
        # the (rounded) batch so there are >= 2 grid steps for v7x megacore
        # sharding whenever B is large enough.
        half = _round_up(max(pl.cdiv(B, 2), 1), 128)
        tile_b = max(128, min(_DEFAULT_TILE_TARGET, half))

    num_tiles = pl.cdiv(B, tile_b)

    # One-time layout transpose so the x tile is (IN=sublanes, batch=lanes) in
    # VMEM.  A producer that can emit x as (IN, B) directly would skip this
    # extra XLA pass over x.
    x_t = x.T

    out = pl.pallas_call(
        thermometer_kernel,
        out_shape=jax.ShapeDtypeStruct((1, B), jnp.float32),
        grid=(num_tiles,),
        in_specs=[
            pl.BlockSpec((in_size, tile_b), lambda i: (0, i)),        # x^T tile
            pl.BlockSpec((three_h, in_size), lambda i: (0, 0)),       # fused W1^T (resident)
            pl.BlockSpec((three_h, 1), lambda i: (0, 0)),             # fused b1   (resident)
            pl.BlockSpec((three_h, 1), lambda i: (0, 0)),             # fused W2*wf (resident)
            pl.BlockSpec(memory_space=pltpu.MemorySpace.SMEM),        # fused scalar bias
        ],
        out_specs=pl.BlockSpec((1, tile_b), lambda i: (0, i)),        # lane-dense output
        compiler_params=pltpu.CompilerParams(
            dimension_semantics=("parallel",),       # megacore sharding on v7x
            vmem_limit_bytes=32 * 1024 * 1024,       # safe on v5e/v6e/v7x; ~10-20 MiB used
        ),
    )(x_t, packed["w1t"], packed["b1"], packed["w2"], packed["bias"])

    # Layout plumbing back to the PyTorch (B, 1) convention.
    return out.reshape(B, 1)


def init_params(key, input_size, hidden_size):
    """Deterministic init mimicking nn.Linear default (uniform +/- 1/sqrt(fan_in))."""
    keys = jax.random.split(key, 14)

    def lin(kw, kb, fan_in, fan_out):
        bound = 1.0 / jnp.sqrt(float(fan_in))
        # Stored already transposed: (fan_in, fan_out) so forward does x @ W.
        w = jax.random.uniform(kw, (fan_in, fan_out), jnp.float32, -bound, bound)
        b = jax.random.uniform(kb, (fan_out,), jnp.float32, -bound, bound)
        return w, b

    w11, b11 = lin(keys[0], keys[1], input_size, hidden_size)
    w12, b12 = lin(keys[2], keys[3], hidden_size, 1)
    w21, b21 = lin(keys[4], keys[5], input_size, hidden_size)
    w22, b22 = lin(keys[6], keys[7], hidden_size, 1)
    w31, b31 = lin(keys[8], keys[9], input_size, hidden_size)
    w32, b32 = lin(keys[10], keys[11], hidden_size, 1)
    wf, bf = lin(keys[12], keys[13], 3, 1)

    return {
        "w11": w11, "b11": b11.reshape(1, hidden_size), "w12": w12, "b12": b12,
        "w21": w21, "b21": b21.reshape(1, hidden_size), "w22": w22, "b22": b22,
        "w31": w31, "b31": b31.reshape(1, hidden_size), "w32": w32, "b32": b32,
        "wf": wf.reshape(3), "bf": bf,
    }


def thermometer_ref(x, p):
    """Pure-JAX reference of the PyTorch forward pass (unfused)."""
    def branch(w1, b1, w2, b2):
        h = jnp.maximum(x @ w1 + b1, 0.0)
        return h @ w2 + b2

    x1 = branch(p["w11"], p["b11"], p["w12"], p["b12"])
    x2 = branch(p["w21"], p["b21"], p["w22"], p["b22"])
    x3 = branch(p["w31"], p["b31"], p["w32"], p["b32"])
    cat = jnp.concatenate([x1, x2, x3], axis=1)  # (B, 3)
    return cat @ p["wf"].reshape(3, 1) + p["bf"]


if __name__ == "__main__":
    input_size = 16
    hidden_size = 32

    key = jax.random.PRNGKey(0)
    kp, kx1, kx2 = jax.random.split(key, 3)
    params = init_params(kp, input_size, hidden_size)
    packed = pack_thermometer_params(params)

    # Case 1: small batch (single ragged block, B < tile_b).
    x_small = jax.random.normal(kx1, (8, input_size), dtype=jnp.float32)
    out_small = jax.block_until_ready(thermometer_forward(x_small, packed))
    ref_small = thermometer_ref(x_small, params)
    assert out_small.shape == (8, 1), out_small.shape
    assert jnp.allclose(out_small, ref_small, atol=1e-5, rtol=1e-5)

    # Case 2: multi-tile + ragged last block (B % tile_b != 0), no host-side pad.
    x_big = jax.random.normal(kx2, (300, input_size), dtype=jnp.float32)
    out_big = jax.block_until_ready(thermometer_forward(x_big, packed))
    ref_big = thermometer_ref(x_big, params)
    assert out_big.shape == (300, 1), out_big.shape
    assert jnp.allclose(out_big, ref_big, atol=1e-5, rtol=1e-5)

    print("KERNEL_OK")
</pallas_src>

<mosaic_0001>
module attributes {stable_mosaic.version = 11 : i64} {
  func.func @thermometer_kernel(%arg0: i32, %arg1: memref<16x128xf32, #tpu.memory_space<vmem>>, %arg2: memref<96x16xf32, #tpu.memory_space<vmem>>, %arg3: memref<96x1xf32, #tpu.memory_space<vmem>>, %arg4: memref<96x1xf32, #tpu.memory_space<vmem>>, %arg5: memref<1xf32, #tpu.memory_space<smem>>, %arg6: memref<1x128xf32, #tpu.memory_space<vmem>>) attributes {dimension_semantics = [#tpu.dimension_semantics<parallel>], iteration_bounds = array<i64: 1>, scalar_prefetch = 0 : i64, scratch_operands = 0 : i64, tpu.core_type = #tpu.core_type<tc>, window_params = [{transform_indices = @transform_0, window_bounds = array<i64: 16, 128>}, {pipeline_mode = #tpu.pipeline_mode<synchronous>, transform_indices = @transform_1, window_bounds = array<i64: 96, 16>}, {pipeline_mode = #tpu.pipeline_mode<synchronous>, transform_indices = @transform_2, window_bounds = array<i64: 96, 1>}, {pipeline_mode = #tpu.pipeline_mode<synchronous>, transform_indices = @transform_3, window_bounds = array<i64: 96, 1>}, {transform_indices = @transform_4, window_bounds = array<i64: 1>}, {transform_indices = @transform_5, window_bounds = array<i64: 1, 128>}]} {
    %c0 = arith.constant 0 : index
    %c0_0 = arith.constant 0 : index
    %0 = vector.load %arg2[%c0, %c0_0] : memref<96x16xf32, #tpu.memory_space<vmem>>, vector<96x16xf32>
    %c0_1 = arith.constant 0 : index
    %c0_2 = arith.constant 0 : index
    %1 = vector.load %arg1[%c0_1, %c0_2] : memref<16x128xf32, #tpu.memory_space<vmem>>, vector<16x128xf32>
    %cst = arith.constant dense<0.000000e+00> : vector<96x128xf32>
    %2 = tpu.matmul %0, %1, %cst {dimension_numbers = #tpu.dot_dimension_numbers<[1], [0], [0], [1], [0, 0, 1, 1], [], []>} : vector<96x16xf32>, vector<16x128xf32>, vector<96x128xf32> -> vector<96x128xf32>
    %c0_3 = arith.constant 0 : index
    %c0_4 = arith.constant 0 : index
    %3 = vector.load %arg3[%c0_3, %c0_4] : memref<96x1xf32, #tpu.memory_space<vmem>>, vector<96x1xf32>
    %4 = vector.broadcast %3 : vector<96x1xf32> to vector<96x128xf32>
    %5 = arith.addf %2, %4 : vector<96x128xf32>
    %cst_5 = arith.constant 0.000000e+00 : f32
    %6 = vector.broadcast %cst_5 : f32 to vector<96x128xf32>
    %7 = arith.maximumf %5, %6 : vector<96x128xf32>
    %c0_6 = arith.constant 0 : index
    %c0_7 = arith.constant 0 : index
    %8 = vector.load %arg4[%c0_6, %c0_7] : memref<96x1xf32, #tpu.memory_space<vmem>>, vector<96x1xf32>
    %9 = vector.broadcast %8 : vector<96x1xf32> to vector<96x128xf32>
    %10 = arith.mulf %7, %9 : vector<96x128xf32>
    %cst_8 = arith.constant dense<0.000000e+00> : vector<128xf32>
    %11 = vector.multi_reduction <add>, %10, %cst_8 [0] : vector<96x128xf32> to vector<128xf32>
    %12 = vector.shape_cast %11 : vector<128xf32> to vector<1x128xf32>
    %c0_9 = arith.constant 0 : index
    %13 = memref.load %arg5[%c0_9] : memref<1xf32, #tpu.memory_space<smem>>
    %14 = vector.broadcast %13 : f32 to vector<1x128xf32>
    %15 = arith.addf %12, %14 : vector<1x128xf32>
    %c0_10 = arith.constant 0 : index
    %c0_11 = arith.constant 0 : index
    %16 = vector.load %arg6[%c0_10, %c0_11] : memref<1x128xf32, #tpu.memory_space<vmem>>, vector<1x128xf32>
    tpu.vector_store %arg6[%c0_10, %c0_11], %15 {strides = array<i32>} : memref<1x128xf32, #tpu.memory_space<vmem>>, vector<1x128xf32>,
    return
  }
  func.func @transform_0(%arg0: i32) -> (i32, i32) {
    %c0_i32 = arith.constant 0 : i32
    %c0_i32_0 = arith.constant 0 : i32
    return %c0_i32, %arg0 : i32, i32
  }
  func.func @transform_1(%arg0: i32) -> (i32, i32) {
    %c0_i32 = arith.constant 0 : i32
    %c0_i32_0 = arith.constant 0 : i32
    %c0_i32_1 = arith.constant 0 : i32
    return %c0_i32, %c0_i32_0 : i32, i32
  }
  func.func @transform_2(%arg0: i32) -> (i32, i32) {
    %c0_i32 = arith.constant 0 : i32
    %c0_i32_0 = arith.constant 0 : i32
    %c0_i32_1 = arith.constant 0 : i32
    return %c0_i32, %c0_i32_0 : i32, i32
  }
  func.func @transform_3(%arg0: i32) -> (i32, i32) {
    %c0_i32 = arith.constant 0 : i32
    %c0_i32_0 = arith.constant 0 : i32
    %c0_i32_1 = arith.constant 0 : i32
    return %c0_i32, %c0_i32_0 : i32, i32
  }
  func.func @transform_4(%arg0: i32) -> i32 {
    %c0_i32 = arith.constant 0 : i32
    %c0_i32_0 = arith.constant 0 : i32
    return %c0_i32 : i32
  }
  func.func @transform_5(%arg0: i32) -> (i32, i32) {
    %c0_i32 = arith.constant 0 : i32
    %c0_i32_0 = arith.constant 0 : i32
    return %c0_i32, %arg0 : i32, i32
  }
}

</mosaic_0001>

<bundles_post_ra>
// kernel: tpu_custom_call.1
= control target key start
LH: loop header
LB: loop body
LE: loop exit
PB: predicated region body
PF: predicated region fallthrough
CT: control target
= control target key end

     0   :  { %v380_v1 = vmov 0   ;;  %vm108_vm0 = vcmask 130048   ;;  %s544_s0 = inlined_call_operand.vmem [shape: f32[16,8], index: 0, kind: input, shape index: {}]   ;;  %s545_s1 = inlined_call_operand.vmem [shape: f32[96,16], index: 1, kind: input, shape index: {}]   ;;  %s546_s2 = inlined_call_operand.vmem [shape: f32[96,1], index: 2, kind: input, shape index: {}]   ;;  %s547_s3 = inlined_call_operand.vmem [shape: f32[96,1], index: 3, kind: input, shape index: {}]   ;;  %s548_s4 = inlined_call_operand.<no memory space> [shape: f32[1], index: 4, kind: input, shape index: {}]   ;;  %s549_s5 = inlined_call_operand.hbm [shape: f32[1,8], index: 5, kind: output, shape index: {}]  }
   0x1   :  { %v35_v0 = vld [vmem:[%s544_s0 + $0x8] sm:$0xff]  ;;  %353 = vset.pattern.permute.xlu2 %v380_v1  ;;  %352 = vset.pattern.permute.xlu1 %v380_v1  ;;  %v40_v2 = vld [vmem:[%s546_s2 + $0x20] sm:$0xff]  ;;  %v38_v3 = vld [vmem:[%s546_s2 + $0x10] sm:$0xff] }
   0x2   :  { %351 = vset.pattern.permute.xlu0 %v380_v1  ;;  %159 = vmatpush.msra.mxu0 %v35_v0  ;;  %v36_v4 = vld [vmem:[%s546_s2] sm:$0xff]  ;;  %v25_v7 = vld [vmem:[%s545_s1 + $0x18] sm:$0xff]  ;;  %v28_v8 = vld [vmem:[%s545_s1 + $0x30] sm:$0xff] }
   0x3   :  { %343 = vmatpush.msra.mxu1 %v35_v0  ;;  %344 = vmatpush.msra.mxu2 %v35_v0  ;;  %v34_v5 = vld [vmem:[%s544_s0] sm:$0xff]  ;;  %v31_v9 = vld [vmem:[%s545_s1 + $0x48] sm:$0xff]  ;;  %v39_v11 = vld [vmem:[%s546_s2 + $0x18] sm:$0xff] }
   0x4   :  { %345 = vmatpush.msra.mxu3 %v35_v0  ;;  %70 = vperm.xlu2 %353, %v40_v2   ;;  %v22_v6 = vld [vmem:[%s545_s1] sm:$0xff]  ;;  %v41_v10 = vld [vmem:[%s546_s2 + $0x28] sm:$0xff] }
   0x5   :  { %60 = vperm.xlu1 %352, %v38_v3   ;;  %50 = vperm.xlu0 %351, %v36_v4   ;;  %v37_v12 = vld [vmem:[%s546_s2 + $0x8] sm:$0xff] }
   0x6   :  { %160 = vmatpush.msra.mxu0 %v34_v5  ;;  %346 = vmatpush.msra.mxu1 %v34_v5 }
   0x7   :  { %347 = vmatpush.msra.mxu2 %v34_v5  ;;  %348 = vmatpush.msra.mxu3 %v34_v5 }
   0x8   :  { %331 = vmatmul.msk.f32.vlgmr.msra.gmra.mxu0 %vm108_vm0, %v22_v6  ;;  %334 = vmatmul.msk.f32.vlgmr.msra.gmra.mxu1 %vm108_vm0, %v25_v7 }
   0x9   :  { %337 = vmatmul.msk.f32.vlgmr.msra.gmra.mxu2 %vm108_vm0, %v28_v8  ;;  %340 = vmatmul.msk.f32.vlgmr.msra.gmra.mxu3 %vm108_vm0, %v31_v9 }
   0xa   :  { %11 = vsyncpa [#allocation4], 0  ;;  %v23_v13 = vld [vmem:[%s545_s1 + $0x8] sm:$0xff]  ;;  %v26_v14 = vld [vmem:[%s545_s1 + $0x20] sm:$0xff]  ;;  %s381_s15 = smov [#allocation3]   ;;  %s322_s18 = sshll.u32 %s549_s5, 4  ;;  %s323_s18 = int_to_ptr.hbm [resolvable:$true] %s322_s18 }
   0xb   :  { %v29_v15 = vld [vmem:[%s545_s1 + $0x38] sm:$0xff]  ;;  %v32_v16 = vld [vmem:[%s545_s1 + $0x50] sm:$0xff]  ;;  %v44_v17 = vld [vmem:[%s546_s2 + $0x40] sm:$0xff]  ;;  %s320_s16 = sshll.u32 %s381_s15, 4  ;;  %s321_s16 = int_to_ptr.vmem [resolvable:$true] %s320_s16 }
   0xc   :  { %75 = vperm.xlu2 %353, %v41_v10   ;;  %v43_v18 = vld [vmem:[%s546_s2 + $0x38] sm:$0xff]  ;;  %v42_v19 = vld [vmem:[%s546_s2 + $0x30] sm:$0xff]  ;;  %v27_v21 = vld [vmem:[%s545_s1 + $0x28] sm:$0xff] }
   0xd   :  { %65 = vperm.xlu1 %352, %v39_v11   ;;  %55 = vperm.xlu0 %351, %v37_v12   ;;  %v24_v20 = vld [vmem:[%s545_s1 + $0x10] sm:$0xff]  ;;  %v30_v22 = vld [vmem:[%s545_s1 + $0x40] sm:$0xff]  ;;  %v33_v23 = vld [vmem:[%s545_s1 + $0x58] sm:$0xff] }
   0xe   :  { %v210_v24 = vld [vmem:[%s547_s3] sm:$0xff]  ;;  %v46_v25 = vld [vmem:[%s546_s2 + $0x50] sm:$0xff]  ;;  %v45_v26 = vld [vmem:[%s546_s2 + $0x48] sm:$0xff] }
   0xf   :  { %v213_v27 = vld [vmem:[%s547_s3 + $0x18] sm:$0xff]  ;;  %v212_v28 = vld [vmem:[%s547_s3 + $0x10] sm:$0xff]  ;;  %v211_v29 = vld [vmem:[%s547_s3 + $0x8] sm:$0xff] }
  0x10   :  { %332 = vmatmul.msk.f32.gmra.mxu0 %vm108_vm0, %v23_v13  ;;  %335 = vmatmul.msk.f32.gmra.mxu1 %vm108_vm0, %v26_v14  ;;  %v216_v30 = vld [vmem:[%s547_s3 + $0x30] sm:$0xff]  ;;  %v215_v31 = vld [vmem:[%s547_s3 + $0x28] sm:$0xff]  ;;  %v214_v32 = vld [vmem:[%s547_s3 + $0x20] sm:$0xff] }
  0x11   :  { %338 = vmatmul.msk.f32.gmra.mxu2 %vm108_vm0, %v29_v15  ;;  %341 = vmatmul.msk.f32.gmra.mxu3 %vm108_vm0, %v32_v16  ;;  %v47_v33 = vld [vmem:[%s546_s2 + $0x58] sm:$0xff]  ;;  %v218_v34 = vld [vmem:[%s547_s3 + $0x40] sm:$0xff]  ;;  %v220_v37 = vld [vmem:[%s547_s3 + $0x50] sm:$0xff] }
  0x12   :  { %v217_v35 = vld [vmem:[%s547_s3 + $0x38] sm:$0xff]  ;;  %v219_v38 = vld [vmem:[%s547_s3 + $0x48] sm:$0xff] }
  0x13   :  { %v221_v36 = vld [vmem:[%s547_s3 + $0x58] sm:$0xff] }
  0x14   :  { %90 = vperm.xlu2 %353, %v44_v17  }
  0x15   :  { %85 = vperm.xlu1 %352, %v43_v18   ;;  %80 = vperm.xlu0 %351, %v42_v19  }
  0x18   :  { %333 = vmatmul.msk.f32.gmra.mxu0 %vm108_vm0, %v24_v20  ;;  %336 = vmatmul.msk.f32.gmra.mxu1 %vm108_vm0, %v27_v21 }
  0x19   :  { %339 = vmatmul.msk.f32.gmra.mxu2 %vm108_vm0, %v30_v22  ;;  %342 = vmatmul.msk.f32.gmra.mxu3 %vm108_vm0, %v33_v23 }
  0x1c   :  { %224 = vperm.xlu2 %353, %v210_v24  }
  0x1d   :  { %100 = vperm.xlu1 %352, %v46_v25   ;;  %95 = vperm.xlu0 %351, %v45_v26  }
  0x24   :  { %239 = vperm.xlu2 %353, %v213_v27  }
  0x25   :  { %234 = vperm.xlu1 %352, %v212_v28   ;;  %229 = vperm.xlu0 %351, %v211_v29  }
  0x2c   :  { %254 = vperm.xlu2 %353, %v216_v30  }
  0x2d   :  { %249 = vperm.xlu1 %352, %v215_v31   ;;  %244 = vperm.xlu0 %351, %v214_v32  }
  0x34   :  { %105 = vperm.xlu2 %353, %v47_v33  }
  0x35   :  { %264 = vperm.xlu1 %352, %v218_v34   ;;  %259 = vperm.xlu0 %351, %v217_v35  }
  0x3c   :  { %279 = vperm.xlu2 %353, %v221_v36  }
  0x3d   :  { %274 = vperm.xlu1 %352, %v220_v37   ;;  %269 = vperm.xlu0 %351, %v219_v38  }
  0x5e   :  { %v71_v39 = vpop.permute.xlu2 %70 }
  0x66   :  { %v76_v40 = vpop.permute.xlu2 %75 }
  0x6e   :  { %v91_v45 = vpop.permute.xlu2 %90 }
  0x76   :  { %v225_v50 = vpop.permute.xlu2 %224 }
  0x77   :  { %v61_v41 = vpop.permute.xlu1 %60  ;;  %v51_v42 = vpop.permute.xlu0 %50 }
  0x7e   :  { %v240_v58 = vpop.permute.xlu2 %239 }
  0x7f   :  { %v66_v43 = vpop.permute.xlu1 %65  ;;  %v56_v44 = vpop.permute.xlu0 %55 }
  0x85   :  { %v162_v46 = vpop.f32.mrf.mxu0  ;;  %v171_v47 = vpop.f32.mrf.mxu1 }
  0x86   :  { %v163_v54 = vadd.f32 %v162_v46, %v51_v42  ;;  %v172_v62 = vadd.f32 %v171_v47, %v66_v43  ;;  %v255_v14 = vpop.permute.xlu2 %254 }
  0x87   :  { %v86_v48 = vpop.permute.xlu1 %85  ;;  %v81_v49 = vpop.permute.xlu0 %80 }
  0x88   :  { %v198_v59 = vmax.f32 %v163_v54, 0.0  ;;  %v201_v6 = vmax.f32 %v172_v62, 0.0 }
  0x8a   :  { %v282_v3 = vmul.f32 %v225_v50, %v198_v59  ;;  %v285_v13 = vmul.f32 %v240_v58, %v201_v6 }
  0x8c   :  { %v180_v55 = vpop.f32.mrf.mxu2  ;;  %v189_v60 = vpop.f32.mrf.mxu3 }
  0x8d   :  { %v165_v51 = vpop.f32.mrf.mxu0  ;;  %v174_v56 = vpop.f32.mrf.mxu1  ;;  %v181_v20 = vadd.f32 %v180_v55, %v81_v49 }
  0x8e   :  { %v166_v57 = vadd.f32 %v165_v51, %v56_v44  ;;  %v175_v7 = vadd.f32 %v174_v56, %v71_v39  ;;  %v106_v36 = vpop.permute.xlu2 %105 }
  0x8f   :  { %v101_v52 = vpop.permute.xlu1 %100  ;;  %v96_v53 = vpop.permute.xlu0 %95  ;;  %v204_v26 = vmax.f32 %v181_v20, 0.0 }
  0x90   :  { %v199_v63 = vmax.f32 %v166_v57, 0.0  ;;  %v202_v15 = vmax.f32 %v175_v7, 0.0  ;;  %v190_v38 = vadd.f32 %v189_v60, %v96_v53 }
  0x91   :  { %v288_v33 = vmul.f32 %v255_v14, %v204_v26 }
  0x92   :  { %v207_v44 = vmax.f32 %v190_v38, 0.0 }
  0x94   :  { %v183_v10 = vpop.f32.mrf.mxu2  ;;  %v192_v16 = vpop.f32.mrf.mxu3 }
  0x95   :  { %v168_v61 = vpop.f32.mrf.mxu0  ;;  %v177_v11 = vpop.f32.mrf.mxu1  ;;  %v184_v23 = vadd.f32 %v183_v10, %v86_v48 }
  0x96   :  { %v169_v0 = vadd.f32 %v168_v61, %v61_v41  ;;  %v178_v17 = vadd.f32 %v177_v11, %v76_v40  ;;  %v193_v40 = vadd.f32 %v192_v16, %v101_v52 }
  0x97   :  { %v235_v1 = vpop.permute.xlu1 %234  ;;  %v230_v2 = vpop.permute.xlu0 %229  ;;  %v205_v29 = vmax.f32 %v184_v23, 0.0 }
  0x98   :  { %v200_v4 = vmax.f32 %v169_v0, 0.0  ;;  %v283_v5 = vmul.f32 %v230_v2, %v199_v63  ;;  %v203_v24 = vmax.f32 %v178_v17, 0.0  ;;  %v208_v49 = vmax.f32 %v193_v40, 0.0 }
  0x99   :  { %v312_v63 = vstv %s548_s4 }
  0x9a   :  { %v284_v8 = vmul.f32 %v235_v1, %v200_v4  ;;  %v294_v9 = vadd.f32 %v283_v5, %v282_v3 }
  0x9c   :  { %v295_v12 = vadd.f32 %v294_v9, %v284_v8  ;;  %v186_v28 = vpop.f32.mrf.mxu2  ;;  %v195_v37 = vpop.f32.mrf.mxu3 }
  0x9d   :  { %v187_v34 = vadd.f32 %v186_v28, %v91_v45  ;;  %v196_v42 = vadd.f32 %v195_v37, %v106_v36  ;;  %v280_v45 = vpop.permute.xlu2 %279 }
  0x9e   :  { %v296_v22 = vadd.f32 %v295_v12, %v285_v13 }
  0x9f   :  { %v250_v18 = vpop.permute.xlu1 %249  ;;  %v245_v19 = vpop.permute.xlu0 %244  ;;  %v206_v41 = vmax.f32 %v187_v34, 0.0  ;;  %v209_v50 = vmax.f32 %v196_v42, 0.0 }
  0xa0   :  { %v286_v21 = vmul.f32 %v245_v19, %v202_v15  ;;  %v287_v27 = vmul.f32 %v250_v18, %v203_v24 }
  0xa1   :  { %v293_v57 = vmul.f32 %v280_v45, %v209_v50 }
  0xa2   :  { %v297_v25 = vadd.f32 %v296_v22, %v286_v21 }
  0xa4   :  { %v298_v30 = vadd.f32 %v297_v25, %v287_v27 }
  0xa6   :  { %v299_v39 = vadd.f32 %v298_v30, %v288_v33 }
  0xa7   :  { %v265_v31 = vpop.permute.xlu1 %264  ;;  %v260_v32 = vpop.permute.xlu0 %259 }
  0xa8   :  { %v289_v35 = vmul.f32 %v260_v32, %v205_v29  ;;  %v290_v46 = vmul.f32 %v265_v31, %v206_v41 }
  0xaa   :  { %v300_v43 = vadd.f32 %v299_v39, %v289_v35 }
  0xac   :  { %v301_v54 = vadd.f32 %v300_v43, %v290_v46 }
  0xaf   :  { %v275_v47 = vpop.permute.xlu1 %274  ;;  %v270_v48 = vpop.permute.xlu0 %269 }
  0xb0   :  { %v291_v51 = vmul.f32 %v270_v48, %v207_v44  ;;  %v292_v55 = vmul.f32 %v275_v47, %v208_v49 }
  0xb2   :  { %v302_v56 = vadd.f32 %v301_v54, %v291_v51 }
  0xb4   :  { %v303_v58 = vadd.f32 %v302_v56, %v292_v55 }
  0xb6   :  { %v304_v59 = vadd.f32 %v303_v58, %v293_v57 }
  0xb8   :  { %v305_v53 = vrot.slane %v304_v59, 4 }
  0xba   :  { %v306_v60 = vadd.f32 %v305_v53, %v304_v59 }
  0xbc   :  { %v307_v52 = vrot.slane %v306_v60, 2 }
  0xbe   :  { %v308_v61 = vadd.f32 %v307_v52, %v306_v60 }
  0xc0   :  { %v309_v62 = vrot.slane %v308_v61, 1 }
  0xc2   :  { %v310_v0 = vadd.f32 %v309_v62, %v308_v61 }
  0xc4   :  { %v313_v1 = vadd.f32 %v312_v63, %v310_v0 }
  0xc6   :  { %314 = vst [vmem:[#allocation3] sm:$0x1] %v313_v1 }
  0xc7   :  { %325 = dma.vmem_to_hbm [thread:$0]  %s321_s16, 16, %s323_s18, [#allocation4]  }
  0xc8   :  { %378 = dma.done.wait [#allocation4], 16  }
  0xc9   :  { %379 = vsyncadd [#allocation4], 4294967280 }
  0xca   :  { %330 = vsyncpa [#allocation4], 1 }

</bundles_post_ra>
